<compile_context>
chip_gen: v5e
topology: v5e:2x2
jax: 0.10.0
libtpu: 0.0.40
codegen_flags: <defaults>
</compile_context>

<pallas_src>
import functools

import jax
import jax.numpy as jnp
from jax.experimental import pallas as pl
from jax.experimental.pallas import tpu as pltpu

EPS = 1e-6


# --------------------------------------------------------------------------
# Kernels
# --------------------------------------------------------------------------
def _layer_norm_epilogue(h, gain, bias, approx):
    # h: (tm, D) f32; torch LayerNormalization: unbiased std, eps added to std.
    d = h.shape[-1]
    mean = jnp.mean(h, axis=-1, keepdims=True)
    c = h - mean
    var = jnp.sum(c * c, axis=-1, keepdims=True) * (1.0 / (d - 1))
    std = jnp.sqrt(var)
    if approx:
        inv = pl.reciprocal(std + EPS, approx=True)   # EUP slot, frees VALU
        return gain * (c * inv) + bias
    return gain * (c / (std + EPS)) + bias


def _sublayer_kernel_simple(x_ref, wt_ref, b_ref, gain_ref, bias_ref, o_ref,
                            *, approx):
    # x_ref:  (TM, D) tile of flattened rows (input dtype, f32 or bf16)
    # wt_ref: (D, D)  pre-transposed bf16 weight, VMEM-resident (Buffered(1))
    # b_ref / gain_ref / bias_ref: (1, D) f32
    x = x_ref[...]

    # bf16 MXU matmul with f32 accumulation.
    y = jnp.dot(x.astype(jnp.bfloat16), wt_ref[...],
                preferred_element_type=jnp.float32)

    # residual add + LayerNorm epilogue, all in f32.
    h = y + b_ref[...].astype(jnp.float32) + x.astype(jnp.float32)
    out = _layer_norm_epilogue(h, gain_ref[...].astype(jnp.float32),
                               bias_ref[...].astype(jnp.float32), approx)
    o_ref[...] = out.astype(o_ref.dtype)


def _sublayer_kernel_ktiled(x_mm_ref, wt_ref, x_res_ref, b_ref, gain_ref,
                            bias_ref, o_ref, acc_ref, *, approx):
    # Grid = (row tiles, K tiles); K is the contraction dim of x @ W^T.
    # x_mm_ref:  (TM, TK) chunk of x for the MXU
    # wt_ref:    (TK, D)  weight K-block (bf16)
    # x_res_ref: (TM, D)  full x rows for the residual (fetched once per row tile)
    # acc_ref:   (TM, D)  f32 scratch accumulator, resident across K steps
    k = pl.program_id(1)

    @pl.when(k == 0)
    def _():
        acc_ref[...] = jnp.zeros_like(acc_ref)

    acc_ref[...] += jnp.dot(x_mm_ref[...].astype(jnp.bfloat16), wt_ref[...],
                            preferred_element_type=jnp.float32)

    @pl.when(k == pl.num_programs(1) - 1)
    def _():
        h = (acc_ref[...] + b_ref[...].astype(jnp.float32)
             + x_res_ref[...].astype(jnp.float32))
        out = _layer_norm_epilogue(h, gain_ref[...].astype(jnp.float32),
                                   bias_ref[...].astype(jnp.float32), approx)
        o_ref[...] = out.astype(o_ref.dtype)


# --------------------------------------------------------------------------
# Planning helpers
# --------------------------------------------------------------------------
def _round_up(n, m):
    return ((n + m - 1) // m) * m


def _vmem_capacity_bytes():
    try:
        return int(pltpu.get_tpu_info().vmem_capacity_bytes)
    except Exception:
        return 64 * 1024 * 1024   # conservative fallback (v7x per-TC size)


def _resident_spec(block_shape, index_map):
    """BlockSpec for a block whose index never changes: single-buffer it."""
    try:
        return pl.BlockSpec(block_shape, index_map,
                            pipeline_mode=pl.Buffered(buffer_count=1))
    except Exception:
        # Older JAX without pipeline_mode / Buffered: fall back to defaults.
        return pl.BlockSpec(block_shape, index_map)


def _simple_footprint(tm, d, x_item, o_item):
    w = d * d * 2                        # bf16 weight, single-buffered
    x = tm * d * x_item * 2              # double-buffered input tile
    o = tm * d * o_item * 2              # double-buffered output tile
    tmp = tm * d * 4 * 3                 # f32 temporaries (y / h / centered)
    params = 3 * d * 4                   # b / gain / bias, single-buffered
    return w + x + o + tmp + params


def _ktiled_footprint(tm, tk, d, x_item, o_item):
    w = tk * d * 2 * 2                   # bf16 weight K-block, double-buffered
    x_mm = tm * tk * x_item * 2
    x_res = tm * d * x_item * 2
    o = tm * d * o_item * 2
    acc = tm * d * 4                     # f32 accumulator scratch
    tmp = tm * d * 4 * 2
    params = 3 * d * 4
    return w + x_mm + x_res + o + acc + tmp + params


def _choose_plan(rows, d, x_item, o_item, requested_tm, budget, k_tiles):
    """Returns (tm, tk, n_k)."""
    tm_cap = _round_up(rows, 8)
    tm = min(_round_up(requested_tm, 8), tm_cap)

    if k_tiles is not None:
        if k_tiles <= 1:
            return tm, d, 1
        assert d % k_tiles == 0 and (d // k_tiles) % 128 == 0, (
            "k_tiles must split d_model into 128-aligned chunks")
        return tm, d // k_tiles, k_tiles

    # Path 1: whole weight resident in VMEM (single-buffered), no K tiling.
    if _simple_footprint(tm, d, x_item, o_item) <= budget:
        return tm, d, 1

    # Path 2: K-tile the contraction dim; keep the MXU-friendly row tile.
    if d % 128 == 0:
        n128 = d // 128
        for n_k in range(2, n128 + 1):
            if n128 % n_k:
                continue
            tk = d // n_k                       # multiple of 128, divides d
            if _ktiled_footprint(tm, tk, d, x_item, o_item) <= budget:
                return tm, tk, n_k

    # Path 3 (last resort, e.g. d not 128-aligned): shrink the row tile,
    # floored at 128 first, then 8.
    t = tm
    while t > 128 and _simple_footprint(t, d, x_item, o_item) > budget:
        t = max(128, _round_up(t // 2, 8))
    while t > 8 and _simple_footprint(t, d, x_item, o_item) > budget:
        t = max(8, _round_up(t // 2, 8))
    return t, d, 1


# --------------------------------------------------------------------------
# Public API
# --------------------------------------------------------------------------
def prepare_params(w, b, gain, bias):
    """One-time parameter prep (hoist out of the per-step forward call):
    transpose + bf16-cast the torch Linear weight so y = x @ wt on the MXU."""
    w = jnp.asarray(w)
    d = w.shape[0]
    return (w.T.astype(jnp.bfloat16),
            jnp.asarray(b).reshape(1, d).astype(jnp.float32),
            jnp.asarray(gain).reshape(1, d).astype(jnp.float32),
            jnp.asarray(bias).reshape(1, d).astype(jnp.float32))


def sublayer_forward(x, params, *, tile_rows=256, k_tiles=None,
                     approx_reciprocal=True, vmem_budget_bytes=None):
    """x: [B, S, D] (f32 or bf16 -> output in same dtype); params from
    prepare_params(). k_tiles forces the K-tiled path (None = auto)."""
    wt, b2, gain2, bias2 = params
    B, S, D = x.shape
    assert D > 1, "LayerNorm with unbiased std requires d_model > 1"
    assert wt.shape == (D, D)

    rows = B * S
    x2 = x.reshape(rows, D)
    x_item = x.dtype.itemsize
    o_item = x.dtype.itemsize

    vmem_cap = _vmem_capacity_bytes()
    if vmem_budget_bytes is None:
        # ~100 MiB of user buffers on v5e/v6e (128 MiB VMEM), ~50 MiB on v7x.
        vmem_budget_bytes = int(vmem_cap * 0.78)

    tm, tk, n_k = _choose_plan(rows, D, x_item, o_item, tile_rows,
                               vmem_budget_bytes, k_tiles)
    grid_m = pl.cdiv(rows, tm)

    if n_k == 1:
        footprint = _simple_footprint(tm, D, x_item, o_item)
        weight_bytes = D * D * 2
    else:
        footprint = _ktiled_footprint(tm, tk, D, x_item, o_item)
        weight_bytes = grid_m * D * D * 2          # re-streamed per row tile

    # Scoped VMEM limit: footprint + headroom for Mosaic internal scratch,
    # capped below the chip's physical VMEM.
    vmem_limit = int(min(int(vmem_cap * 0.9),
                         max(32 * 1024 * 1024,
                             footprint + 16 * 1024 * 1024)))

    cost = pl.CostEstimate(
        flops=2 * rows * D * D + 10 * rows * D,
        transcendentals=2 * rows,                  # sqrt + reciprocal per row
        bytes_accessed=(rows * D * (x_item * (1 if n_k == 1 else 2) + o_item)
                        + weight_bytes + 3 * D * 4),
    )

    compiler_params = pltpu.CompilerParams(
        dimension_semantics=(("parallel",) if n_k == 1
                             else ("parallel", "arbitrary")),
        vmem_limit_bytes=vmem_limit,
    )

    if n_k == 1:
        kernel = functools.partial(_sublayer_kernel_simple,
                                   approx=approx_reciprocal)
        grid_spec = pltpu.PrefetchScalarGridSpec(
            num_scalar_prefetch=0,
            grid=(grid_m,),
            in_specs=[
                pl.BlockSpec((tm, D), lambda i: (i, 0)),       # x row tile
                _resident_spec((D, D), lambda i: (0, 0)),      # weight (1 buf)
                _resident_spec((1, D), lambda i: (0, 0)),      # linear bias
                _resident_spec((1, D), lambda i: (0, 0)),      # LN gain
                _resident_spec((1, D), lambda i: (0, 0)),      # LN bias
            ],
            out_specs=pl.BlockSpec((tm, D), lambda i: (i, 0)),
        )
        out2 = pl.pallas_call(
            kernel,
            out_shape=jax.ShapeDtypeStruct((rows, D), x.dtype),
            grid_spec=grid_spec,
            compiler_params=compiler_params,
            cost_estimate=cost,
        )(x2, wt, b2, gain2, bias2)
    else:
        kernel = functools.partial(_sublayer_kernel_ktiled,
                                   approx=approx_reciprocal)
        grid_spec = pltpu.PrefetchScalarGridSpec(
            num_scalar_prefetch=0,
            grid=(grid_m, n_k),
            in_specs=[
                pl.BlockSpec((tm, tk), lambda i, k: (i, k)),   # x K-chunk (MXU)
                pl.BlockSpec((tk, D), lambda i, k: (k, 0)),    # weight K-block
                pl.BlockSpec((tm, D), lambda i, k: (i, 0)),    # x full rows (residual)
                _resident_spec((1, D), lambda i, k: (0, 0)),   # linear bias
                _resident_spec((1, D), lambda i, k: (0, 0)),   # LN gain
                _resident_spec((1, D), lambda i, k: (0, 0)),   # LN bias
            ],
            out_specs=pl.BlockSpec((tm, D), lambda i, k: (i, 0)),
            scratch_shapes=[pltpu.VMEM((tm, D), jnp.float32)],
        )
        out2 = pl.pallas_call(
            kernel,
            out_shape=jax.ShapeDtypeStruct((rows, D), x.dtype),
            grid_spec=grid_spec,
            compiler_params=compiler_params,
            cost_estimate=cost,
        )(x2, wt, x2, b2, gain2, bias2)

    return out2.reshape(B, S, D)


def sublayer_reference(x, w, b, gain, bias):
    # Numerics matched to the kernel: bf16 matmul with f32 accumulation,
    # f32 residual + LayerNorm (torch semantics: unbiased std, eps on std).
    y = jnp.einsum("bsd,od->bso",
                   x.astype(jnp.bfloat16), w.astype(jnp.bfloat16),
                   preferred_element_type=jnp.float32) + b.astype(jnp.float32)
    h = y + x.astype(jnp.float32)
    d = h.shape[-1]
    mean = jnp.mean(h, axis=-1, keepdims=True)
    c = h - mean
    std = jnp.sqrt(jnp.sum(c * c, axis=-1, keepdims=True) / (d - 1))
    return gain * c / (std + EPS) + bias


if __name__ == "__main__":
    key = jax.random.PRNGKey(0)
    kx, kw, kb = jax.random.split(key, 3)

    # --- Test 1: small dense shapes (weight-resident simple path) ---
    B, S, D = 2, 8, 32
    x = jax.random.normal(kx, (B, S, D), dtype=jnp.float32)
    w = jax.random.normal(kw, (D, D), dtype=jnp.float32) * (1.0 / jnp.sqrt(D))
    b = jax.random.normal(kb, (D,), dtype=jnp.float32) * 0.01
    gain = jnp.ones((D,), dtype=jnp.float32)   # LayerNormalization init
    bias = jnp.zeros((D,), dtype=jnp.float32)  # LayerNormalization init

    params = prepare_params(w, b, gain, bias)  # one-time transpose + bf16 cast
    out = jax.block_until_ready(sublayer_forward(x, params))
    ref = sublayer_reference(x, w, b, gain, bias)
    assert out.shape == (B, S, D)
    assert jnp.allclose(out, ref, atol=2e-2, rtol=2e-2), "mismatch (dense)"

    # --- Test 2: ragged row count (partial last block, no pad/slice) ---
    x3 = jax.random.normal(kx, (3, 5, D), dtype=jnp.float32)
    out3 = jax.block_until_ready(sublayer_forward(x3, params))
    ref3 = sublayer_reference(x3, w, b, gain, bias)
    assert out3.shape == (3, 5, D)
    assert jnp.allclose(out3, ref3, atol=2e-2, rtol=2e-2), "mismatch (ragged)"

    # --- Test 3: K-tiled path (forced), the large-d_model / v7x plan ---
    D2 = 256
    kx2, kw2, kb2 = jax.random.split(jax.random.PRNGKey(0), 3)
    xk = jax.random.normal(kx2, (2, 8, D2), dtype=jnp.float32)
    wk = jax.random.normal(kw2, (D2, D2), dtype=jnp.float32) * (1.0 / jnp.sqrt(D2))
    bk = jax.random.normal(kb2, (D2,), dtype=jnp.float32) * 0.01
    gk = jnp.ones((D2,), dtype=jnp.float32)
    sk = jnp.zeros((D2,), dtype=jnp.float32)
    pk = prepare_params(wk, bk, gk, sk)
    outk = jax.block_until_ready(sublayer_forward(xk, pk, k_tiles=2))
    refk = sublayer_reference(xk, wk, bk, gk, sk)
    assert outk.shape == (2, 8, D2)
    assert jnp.allclose(outk, refk, atol=2e-2, rtol=2e-2), "mismatch (K-tiled)"

    print("KERNEL_OK")
</pallas_src>

<mosaic_0001>
module attributes {stable_mosaic.version = 11 : i64} {
  func.func @_sublayer_kernel_simple(%arg0: i32, %arg1: memref<16x32xf32, #tpu.memory_space<vmem>>, %arg2: memref<32x32xbf16, #tpu.memory_space<vmem>>, %arg3: memref<1x32xf32, #tpu.memory_space<vmem>>, %arg4: memref<1x32xf32, #tpu.memory_space<vmem>>, %arg5: memref<1x32xf32, #tpu.memory_space<vmem>>, %arg6: memref<16x32xf32, #tpu.memory_space<vmem>>) attributes {dimension_semantics = [#tpu.dimension_semantics<parallel>], iteration_bounds = array<i64: 1>, scalar_prefetch = 0 : i64, scratch_operands = 0 : i64, tpu.core_type = #tpu.core_type<tc>, window_params = [{transform_indices = @transform_0, window_bounds = array<i64: 16, 32>}, {pipeline_mode = #tpu.pipeline_mode<synchronous>, transform_indices = @transform_1, window_bounds = array<i64: 32, 32>}, {pipeline_mode = #tpu.pipeline_mode<synchronous>, transform_indices = @transform_2, window_bounds = array<i64: 1, 32>}, {pipeline_mode = #tpu.pipeline_mode<synchronous>, transform_indices = @transform_3, window_bounds = array<i64: 1, 32>}, {pipeline_mode = #tpu.pipeline_mode<synchronous>, transform_indices = @transform_4, window_bounds = array<i64: 1, 32>}, {transform_indices = @transform_5, window_bounds = array<i64: 16, 32>}]} {
    %c0 = arith.constant 0 : index
    %c0_0 = arith.constant 0 : index
    %0 = vector.load %arg1[%c0, %c0_0] : memref<16x32xf32, #tpu.memory_space<vmem>>, vector<16x32xf32>
    %1 = arith.truncf %0 : vector<16x32xf32> to vector<16x32xbf16>
    %c0_1 = arith.constant 0 : index
    %c0_2 = arith.constant 0 : index
    %2 = vector.load %arg2[%c0_1, %c0_2] : memref<32x32xbf16, #tpu.memory_space<vmem>>, vector<32x32xbf16>
    %cst = arith.constant dense<0.000000e+00> : vector<16x32xf32>
    %3 = tpu.matmul %1, %2, %cst {dimension_numbers = #tpu.dot_dimension_numbers<[1], [0], [0], [1], [0, 0, 1, 1], [], []>} : vector<16x32xbf16>, vector<32x32xbf16>, vector<16x32xf32> -> vector<16x32xf32>
    %c0_3 = arith.constant 0 : index
    %c0_4 = arith.constant 0 : index
    %4 = vector.load %arg3[%c0_3, %c0_4] : memref<1x32xf32, #tpu.memory_space<vmem>>, vector<1x32xf32>
    %5 = vector.broadcast %4 : vector<1x32xf32> to vector<16x32xf32>
    %6 = arith.addf %3, %5 : vector<16x32xf32>
    %7 = arith.addf %6, %0 : vector<16x32xf32>
    %c0_5 = arith.constant 0 : index
    %c0_6 = arith.constant 0 : index
    %8 = vector.load %arg4[%c0_5, %c0_6] : memref<1x32xf32, #tpu.memory_space<vmem>>, vector<1x32xf32>
    %c0_7 = arith.constant 0 : index
    %c0_8 = arith.constant 0 : index
    %9 = vector.load %arg5[%c0_7, %c0_8] : memref<1x32xf32, #tpu.memory_space<vmem>>, vector<1x32xf32>
    %cst_9 = arith.constant dense<0.000000e+00> : vector<16xf32>
    %10 = vector.multi_reduction <add>, %7, %cst_9 [1] : vector<16x32xf32> to vector<16xf32>
    %11 = vector.shape_cast %10 : vector<16xf32> to vector<16x1xf32>
    %cst_10 = arith.constant 3.200000e+01 : f32
    %12 = vector.broadcast %cst_10 : f32 to vector<16x1xf32>
    %13 = arith.divf %11, %12 : vector<16x1xf32>
    %14 = vector.broadcast %13 : vector<16x1xf32> to vector<16x32xf32>
    %15 = arith.subf %7, %14 : vector<16x32xf32>
    %16 = arith.mulf %15, %15 : vector<16x32xf32>
    %cst_11 = arith.constant dense<0.000000e+00> : vector<16xf32>
    %17 = vector.multi_reduction <add>, %16, %cst_11 [1] : vector<16x32xf32> to vector<16xf32>
    %18 = vector.shape_cast %17 : vector<16xf32> to vector<16x1xf32>
    %cst_12 = arith.constant 0.0322580636 : f32
    %19 = vector.broadcast %cst_12 : f32 to vector<16x1xf32>
    %20 = arith.mulf %18, %19 : vector<16x1xf32>
    %21 = math.sqrt %20 : vector<16x1xf32>
    %cst_13 = arith.constant 9.99999997E-7 : f32
    %22 = vector.broadcast %cst_13 : f32 to vector<16x1xf32>
    %23 = arith.addf %21, %22 : vector<16x1xf32>
    %24 = tpu.reciprocal %23 {approx = true} : vector<16x1xf32> -> vector<16x1xf32>
    %25 = vector.broadcast %24 : vector<16x1xf32> to vector<16x32xf32>
    %26 = arith.mulf %15, %25 : vector<16x32xf32>
    %27 = vector.broadcast %8 : vector<1x32xf32> to vector<16x32xf32>
    %28 = arith.mulf %27, %26 : vector<16x32xf32>
    %29 = vector.broadcast %9 : vector<1x32xf32> to vector<16x32xf32>
    %30 = arith.addf %28, %29 : vector<16x32xf32>
    %c0_14 = arith.constant 0 : index
    %c0_15 = arith.constant 0 : index
    %31 = vector.load %arg6[%c0_14, %c0_15] : memref<16x32xf32, #tpu.memory_space<vmem>>, vector<16x32xf32>
    tpu.vector_store %arg6[%c0_14, %c0_15], %30 {strides = array<i32>} : memref<16x32xf32, #tpu.memory_space<vmem>>, vector<16x32xf32>,
    return
  }
  func.func @transform_0(%arg0: i32) -> (i32, i32) {
    %c0_i32 = arith.constant 0 : i32
    %c0_i32_0 = arith.constant 0 : i32
    return %arg0, %c0_i32 : i32, i32
  }
  func.func @transform_1(%arg0: i32) -> (i32, i32) {
    %c0_i32 = arith.constant 0 : i32
    %c0_i32_0 = arith.constant 0 : i32
    %c0_i32_1 = arith.constant 0 : i32
    return %c0_i32, %c0_i32_0 : i32, i32
  }
  func.func @transform_2(%arg0: i32) -> (i32, i32) {
    %c0_i32 = arith.constant 0 : i32
    %c0_i32_0 = arith.constant 0 : i32
    %c0_i32_1 = arith.constant 0 : i32
    return %c0_i32, %c0_i32_0 : i32, i32
  }
  func.func @transform_3(%arg0: i32) -> (i32, i32) {
    %c0_i32 = arith.constant 0 : i32
    %c0_i32_0 = arith.constant 0 : i32
    %c0_i32_1 = arith.constant 0 : i32
    return %c0_i32, %c0_i32_0 : i32, i32
  }
  func.func @transform_4(%arg0: i32) -> (i32, i32) {
    %c0_i32 = arith.constant 0 : i32
    %c0_i32_0 = arith.constant 0 : i32
    %c0_i32_1 = arith.constant 0 : i32
    return %c0_i32, %c0_i32_0 : i32, i32
  }
  func.func @transform_5(%arg0: i32) -> (i32, i32) {
    %c0_i32 = arith.constant 0 : i32
    %c0_i32_0 = arith.constant 0 : i32
    return %arg0, %c0_i32 : i32, i32
  }
}

</mosaic_0001>

<bundles_post_ra>
// kernel: tpu_custom_call.1
= control target key start
LH: loop header
LB: loop body
LE: loop exit
PB: predicated region body
PF: predicated region fallthrough
CT: control target
= control target key end

     0   :  { %10 = vsyncpa [#allocation3], 0  ;;  %s367_s0 = inlined_call_operand.hbm [shape: f32[16,32], index: 0, kind: input, shape index: {}]   ;;  %s368_s1 = inlined_call_operand.hbm [shape: bf16[32,32], index: 1, kind: input, shape index: {}]   ;;  %s369_s2 = inlined_call_operand.vmem [shape: f32[1,32], index: 2, kind: input, shape index: {}]   ;;  %s370_s3 = inlined_call_operand.vmem [shape: f32[1,32], index: 3, kind: input, shape index: {}]   ;;  %s371_s4 = inlined_call_operand.vmem [shape: f32[1,32], index: 4, kind: input, shape index: {}]   ;;  %s372_s5 = inlined_call_operand.hbm [shape: f32[16,32], index: 5, kind: output, shape index: {}]  }
   0x1   :  { %11 = vsyncpa [#allocation6], 0 }
   0x2   :  { %12 = vsyncpa [#allocation4], 0  ;;  %s17_s20 = sshll.u32 %s367_s0, 4  ;;  %s298_s21 = smov [#allocation2]   ;;  %s18_s20 = int_to_ptr.hbm [resolvable:$true] %s17_s20 }
   0x3   :  { %s19_s22 = sshll.u32 %s298_s21, 4  ;;  %s30_s25 = sshll.u32 %s368_s1, 4  ;;  %s20_s22 = int_to_ptr.vmem [resolvable:$true] %s19_s22  ;;  %s31_s25 = int_to_ptr.hbm [resolvable:$true] %s30_s25 }
   0x4   :  { %s299_s26 = smov 128   ;;  %s300_s27 = smov 8  }
   0x5   :  { %25 = dma.hbm_to_vmem [thread:$0]  %s18_s20, 256, %s20_s22, [#allocation3], %s299_s26, %s299_s26, %s300_s27  }
   0x6   :  { %s301_s28 = smov [#allocation5]   ;;  %s302_s30 = smov 64  }
   0x7   :  { %s32_s29 = sshll.u32 %s301_s28, 4  ;;  %s303_s0 = smov 4   ;;  %s33_s29 = int_to_ptr.vmem [resolvable:$true] %s32_s29 }
   0x8   :  { %38 = dma.hbm_to_vmem [thread:$0]  %s31_s25, 256, %s33_s29, [#allocation6], %s302_s30, %s302_s30, %s303_s0  }
   0x9   :  { %292 = dma.done.wait [#allocation3], 256  }
   0xa   :  { %293 = vsyncadd [#allocation3], 4294967040 }
   0xb   :  { %294 = dma.done.wait [#allocation6], 256  }
   0xc   :  { %295 = vsyncadd [#allocation6], 4294967040  ;;  %v198_v0 = vld [vmem:[#allocation5 + $0x8] sm:$0xff]  ;;  %v197_v1 = vld [vmem:[#allocation5] sm:$0xff]  ;;  %vm77_vm0 = vcmask 261120   ;;  %v304_v14 = vmov 32.0  }
   0xd   :  { %v54_v2 = vld [vmem:[#allocation2] sm:$0xff]  ;;  %87 = vmatpush.bf16.msra.mxu0 %v198_v0  ;;  %v55_v3 = vld [vmem:[#allocation2 + $0x8] sm:$0xff]  ;;  %210 = vrcp.f32 %v304_v14  ;;  %s305_s10 = smov [#allocation7]  }
   0xe   :  { %v56_v4 = vpack.c.bf16 %v55_v3, %v54_v2  ;;  %v207_v5 = vld [vmem:[%s369_s2] ss:$0 sm:$0xff]  ;;  %s172_s11 = sshll.u32 %s305_s10, 4  ;;  %s173_s11 = int_to_ptr.vmem [resolvable:$true] %s172_s11 }
   0xf   :  { %v208_v56 = vld [vmem:[%s370_s3] ss:$0 sm:$0xff]  ;;  %s174_s3 = sshll.u32 %s372_s5, 4  ;;  %s175_s3 = int_to_ptr.hbm [resolvable:$true] %s174_s3 }
  0x10   :  { %v209_v60 = vld [vmem:[%s371_s4] ss:$0 sm:$0xff] }
  0x11   :  { %88 = vmatpush.bf16.msra.mxu0 %v197_v1 }
  0x13   :  { %v211_v15 = vpop.eup %210 }
  0x14   :  { %196 = vmatmul.msk.bf16.vlgmr.msra.gmra.mxu0 %vm77_vm0, %v56_v4  ;;  %v106_v16 = vmul.f32 32.0, %v211_v15  ;;  %vm110_vm1 = vweird.f32 %v211_v15 }
  0x16   :  { %v107_v17 = vsub.f32 1.0, %v106_v16 }
  0x18   :  { %v108_v18 = vmul.f32 %v211_v15, %v107_v17 }
  0x1a   :  { %v109_v19 = vadd.f32 %v211_v15, %v108_v18 }
  0x1c   :  { %v111_v20 = vsel %vm110_vm1, %v211_v15, %v109_v19 }
  0x91   :  { %v90_v6 = vpop.f32.mrf.mxu0 }
  0x92   :  { %v91_v7 = vadd.f32 %v207_v5, %v90_v6 }
  0x94   :  { %v95_v8 = vadd.f32 %v91_v7, %v54_v2 }
  0x96   :  { %v99_v9 = vsel %vm77_vm0, %v95_v8, 0.0 }
  0x97   :  { %100 = vadd.xlane.f32.xlu0 %v99_v9 }
  0x99   :  { %v92_v10 = vpop.f32.mrf.mxu0 }
  0x9a   :  { %v93_v11 = vadd.f32 %v207_v5, %v92_v10 }
  0x9c   :  { %v96_v12 = vadd.f32 %v93_v11, %v55_v3 }
  0x9e   :  { %v102_v13 = vsel %vm77_vm0, %v96_v12, 0.0 }
  0x9f   :  { %103 = vadd.xlane.f32.xlu0 %v102_v13 }
 0x10a   :  { %v101_v21 = vpop.xlane.xlu0 %100 }
 0x10b   :  { %v112_v22 = vmul.f32 %v111_v20, %v101_v21 }
 0x10d   :  { %v114_v23 = vsub.f32 %v95_v8, %v112_v22 }
 0x10f   :  { %v116_v24 = vmul.f32 %v114_v23, %v114_v23 }
 0x111   :  { %v118_v25 = vsel %vm77_vm0, %v116_v24, 0.0 }
 0x112   :  { %119 = vadd.xlane.f32.xlu1 %v118_v25  ;;  %v104_v26 = vpop.xlane.xlu0 %103 }
 0x113   :  { %v113_v27 = vmul.f32 %v111_v20, %v104_v26 }
 0x115   :  { %v115_v28 = vsub.f32 %v96_v12, %v113_v27 }
 0x117   :  { %v117_v29 = vmul.f32 %v115_v28, %v115_v28 }
 0x119   :  { %v121_v30 = vsel %vm77_vm0, %v117_v29, 0.0 }
 0x11a   :  { %122 = vadd.xlane.f32.xlu1 %v121_v30 }
 0x185   :  { %v120_v31 = vpop.xlane.xlu1 %119 }
 0x186   :  { %v124_v32 = vmul.f32 0.032258064, %v120_v31 }
 0x188   :  { %212 = vrsqrt.f32 %v124_v32  ;;  %vm133_vm2 = vcmp.eq.f32.partialorder %v124_v32, inf  ;;  %v136_v45 = vand.u32 2147483648, %v124_v32  ;;  %vm135_vm3 = vcmp.eq.f32.partialorder %v124_v32, 0.0 }
 0x18d   :  { %v123_v33 = vpop.xlane.xlu1 %122 }
 0x18e   :  { %v213_v34 = vpop.eup %212  ;;  %v125_v35 = vmul.f32 0.032258064, %v123_v33 }
 0x18f   :  { %v127_v36 = vmul.f32 %v213_v34, %v124_v32 }
 0x190   :  { %214 = vrsqrt.f32 %v125_v35  ;;  %vm145_vm4 = vcmp.eq.f32.partialorder %v125_v35, inf  ;;  %v148_v53 = vand.u32 2147483648, %v125_v35  ;;  %vm147_vm5 = vcmp.eq.f32.partialorder %v125_v35, 0.0 }
 0x191   :  { %v128_v37 = vmul.f32 %v213_v34, %v127_v36 }
 0x193   :  { %v129_v38 = vmul.f32 0.5, %v128_v37 }
 0x195   :  { %v130_v39 = vsub.f32 1.5, %v129_v38 }
 0x196   :  { %v215_v40 = vpop.eup %214 }
 0x197   :  { %v131_v41 = vmul.f32 %v213_v34, %v130_v39  ;;  %v139_v42 = vmul.f32 %v215_v40, %v125_v35 }
 0x199   :  { %v132_v43 = vmul.f32 %v131_v41, %v124_v32  ;;  %v140_v44 = vmul.f32 %v215_v40, %v139_v42 }
 0x19b   :  { %v141_v46 = vmul.f32 0.5, %v140_v44  ;;  %v134_v47 = vsel %vm133_vm2, %v124_v32, %v132_v43 }
 0x19c   :  { %v137_v48 = vsel %vm135_vm3, %v136_v45, %v134_v47 }
 0x19d   :  { %v142_v49 = vsub.f32 1.5, %v141_v46  ;;  %v150_v50 = vadd.f32 1e-06, %v137_v48 }
 0x19f   :  { %v143_v51 = vmul.f32 %v215_v40, %v142_v49  ;;  %216 = vrcp.f32 %v150_v50 }
 0x1a1   :  { %v144_v52 = vmul.f32 %v143_v51, %v125_v35 }
 0x1a3   :  { %v146_v54 = vsel %vm145_vm4, %v125_v35, %v144_v52 }
 0x1a4   :  { %v149_v55 = vsel %vm147_vm5, %v148_v53, %v146_v54 }
 0x1a5   :  { %v217_v57 = vpop.eup %216  ;;  %v151_v58 = vadd.f32 1e-06, %v149_v55 }
 0x1a6   :  { %v154_v59 = vmul.f32 %v217_v57, %v114_v23 }
 0x1a7   :  { %218 = vrcp.f32 %v151_v58 }
 0x1a8   :  { %v159_v61 = vmul.f32 %v208_v56, %v154_v59 }
 0x1aa   :  { %v164_v62 = vadd.f32 %v209_v60, %v159_v61 }
 0x1ac   :  { %166 = vst.msk [vmem:[#allocation7] sm:$0xff] %vm77_vm0, %v164_v62 }
 0x1ad   :  { %v219_v63 = vpop.eup %218 }
 0x1ae   :  { %v155_v0 = vmul.f32 %v219_v63, %v115_v28 }
 0x1b0   :  { %v160_v1 = vmul.f32 %v208_v56, %v155_v0 }
 0x1b2   :  { %v165_v2 = vadd.f32 %v209_v60, %v160_v1 }
 0x1b4   :  { %167 = vst.msk [vmem:[#allocation7 + $0x8] sm:$0xff] %vm77_vm0, %v165_v2 }
 0x1b5   :  { %180 = dma.vmem_to_hbm [thread:$0]  %s173_s11, 256, %s175_s3, [#allocation4], %s299_s26, %s299_s26, %s300_s27  }
 0x1b6   :  { %296 = dma.done.wait [#allocation4], 256  }
 0x1b7   :  { %297 = vsyncadd [#allocation4], 4294967040 }
 0x1b8   :  { %185 = vsyncpa [#allocation3], 1 }
 0x1b9   :  { %186 = vsyncpa [#allocation6], 1 }
 0x1ba   :  { %187 = vsyncpa [#allocation4], 1 }

</bundles_post_ra>
